<compile_context>
chip_gen: v7x
topology: tpu7x:2x2x1
jax: 0.10.0
libtpu: 0.0.40
codegen_flags: <defaults>
</compile_context>

<pallas_src>
import functools

import jax
import jax.numpy as jnp
from jax import lax
from jax.experimental import pallas as pl
from jax.experimental.pallas import tpu as pltpu

LANE = 128


def _round_up(x, m):
    return (x + m - 1) // m * m


def _im_readout_kernel(xr_ref, lab_ref, wr_ref, br_ref, dc_ref, bc_ref, out_ref):
    # Receptive compartment: cast the f32 batch tile to the MXU dtype in-kernel,
    # contract last dims on the MXU (== x_r @ W_r^T, f32 accumulation).
    xr = xr_ref[...].astype(wr_ref.dtype)
    r = lax.dot_general(
        xr, wr_ref[...],
        dimension_numbers=(((1,), (1,)), ((), ())),
        preferred_element_type=jnp.float32,
    ) + br_ref[...]

    # Contextual compartment: connections == eye(N) and x_c is a one-hot label, so
    #   c[i, j] = (j == label_i) * diag(W_c)[j] + b_c[j]
    # Built from the int32 label column + a 2-D iota -> pure VPU, no one-hot stream.
    col = lax.broadcasted_iota(jnp.int32, r.shape, 1)
    on = dc_ref[...] + bc_ref[...]
    c = jnp.where(col == lab_ref[...], on, bc_ref[...])

    # Kay–Phillips bivariate activation; clamp the exponent so exp never overflows
    # (tanh saturates identically for |A| this large).
    rc = jnp.clip(r * c, -80.0, 80.0)
    a = 0.5 * r * (1.0 + jnp.exp(rc))

    # sample=False -> deterministic output; single lane-dense store in out dtype.
    out_ref[...] = jnp.tanh(a).astype(out_ref.dtype)


@functools.partial(
    jax.jit,
    static_argnames=("tb", "matmul_dtype", "out_dtype", "vmem_limit_bytes"))
def infomorphic_readout_forward(x_img, x_lab, w_r, b_r, w_c, b_c, *,
                                tb=1024, matmul_dtype=jnp.bfloat16,
                                out_dtype=jnp.bfloat16, vmem_limit_bytes=None):
    """Flatten NCHW image, convert the one-hot label to an int32 column, run the
    batch-tiled kernel, and return f32 logits of shape (B, N).

    tb: batch tile.  1024 keeps the double-buffered f32 x_r tile well under every
    generation's scoped-VMEM default at MNIST/CIFAR-flat sizes; raise to 2048 on
    v6e/v7x (set vmem_limit_bytes) for very large batches.
    """
    B = x_img.shape[0]
    N = w_c.shape[0]
    D_r = 1
    for d in x_img.shape[1:]:
        D_r *= d
    n_pad = _round_up(N, LANE)

    # x_r stays f32 and unpadded along D_r (full-extent last block dim is legal even
    # when D_r % 128 != 0); batch is padded only to a sublane multiple (no-op when
    # already aligned), the last grid block may be ragged and is sliced off below.
    x_r = x_img.reshape(B, D_r)
    # x[1] is a one-hot label in this model -> recover the int class index (tiny op).
    labels = jnp.argmax(x_lab, axis=-1).astype(jnp.int32)
    B8 = _round_up(B, 8)
    if B8 != B:
        x_r = jnp.pad(x_r, ((0, B8 - B), (0, 0)))
        labels = jnp.pad(labels, (0, B8 - B))
    labels = labels.reshape(B8, 1)

    # Batch tile: large (amortizes ~0.35 us/step), but keep >= 2 grid steps when the
    # batch allows so dimension_semantics=("parallel",) shards across v7x's 2 TCs.
    tb_eff = _round_up(min(tb, B8), 8)
    if B8 >= 16 and pl.cdiv(B8, tb_eff) < 2:
        tb_eff = _round_up(pl.cdiv(B8, 2), 8)
    grid = (pl.cdiv(B8, tb_eff),)

    # Small VMEM-resident operands (W_r is the only sizeable one; bf16 halves it).
    w_r_p = jnp.pad(w_r.astype(jnp.float32),
                    ((0, n_pad - N), (0, 0))).astype(matmul_dtype)
    b_r_p = jnp.pad(b_r.astype(jnp.float32), (0, n_pad - N)).reshape(1, n_pad)
    d_c = jnp.pad(jnp.diagonal(w_c).astype(jnp.float32),
                  (0, n_pad - N)).reshape(1, n_pad)
    b_c_p = jnp.pad(b_c.astype(jnp.float32), (0, n_pad - N)).reshape(1, n_pad)

    batch_spec = lambda shape: pl.BlockSpec(shape, lambda i: (i, 0))
    resident = lambda shape: pl.BlockSpec(shape, lambda i: (0, 0))

    cp_kwargs = dict(dimension_semantics=("parallel",))
    if vmem_limit_bytes is not None:
        cp_kwargs["vmem_limit_bytes"] = vmem_limit_bytes

    out_full = pl.pallas_call(
        _im_readout_kernel,
        out_shape=jax.ShapeDtypeStruct((B8, n_pad), out_dtype),
        grid=grid,
        in_specs=[
            batch_spec((tb_eff, D_r)),    # x_r   (f32, pipelined over batch)
            batch_spec((tb_eff, 1)),      # int32 labels (tiny, pipelined)
            resident((n_pad, D_r)),       # W_r   (bf16, VMEM-resident)
            resident((1, n_pad)),         # b_r
            resident((1, n_pad)),         # diag(W_c)
            resident((1, n_pad)),         # b_c
        ],
        out_specs=batch_spec((tb_eff, n_pad)),
        compiler_params=pltpu.CompilerParams(**cp_kwargs),
    )(x_r, labels, w_r_p, b_r_p, d_c, b_c_p)

    # Strip batch/lane padding; return f32 (tiny cast on the sliced result only).
    return out_full[:B, :N].astype(jnp.float32)


def init_params(key, d_r, n_out):
    """Deterministic PyTorch-Linear-style init (uniform +/- 1/sqrt(fan_in))."""
    k1, k2, k3, k4 = jax.random.split(key, 4)
    lim_r = 1.0 / jnp.sqrt(jnp.float32(d_r))
    lim_c = 1.0 / jnp.sqrt(jnp.float32(n_out))
    w_r = jax.random.uniform(k1, (n_out, d_r), jnp.float32, -lim_r, lim_r)
    b_r = jax.random.uniform(k2, (n_out,), jnp.float32, -lim_r, lim_r)
    w_c = jax.random.uniform(k3, (n_out, n_out), jnp.float32, -lim_c, lim_c)
    b_c = jax.random.uniform(k4, (n_out,), jnp.float32, -lim_c, lim_c)
    return w_r, b_r, w_c, b_c


if __name__ == "__main__":
    key = jax.random.PRNGKey(0)
    k_img, k_lab, k_par = jax.random.split(key, 3)

    B, C, H, W = 16, 1, 8, 8        # small NCHW image input (2-step grid)
    N_OUT = 10                      # number of output neurons == number of classes
    D_R = C * H * W

    x_img = jax.random.normal(k_img, (B, C, H, W), jnp.float32)
    labels = jax.random.randint(k_lab, (B,), 0, N_OUT)
    x_lab = jax.nn.one_hot(labels, N_OUT, dtype=jnp.float32)

    w_r, b_r, w_c, b_c = init_params(k_par, D_R, N_OUT)

    out = infomorphic_readout_forward(x_img, x_lab, w_r, b_r, w_c, b_c)
    out = jax.block_until_ready(out)

    # Sanity: shape, dtype, finite values.
    assert out.shape == (B, N_OUT)
    assert out.dtype == jnp.float32
    assert bool(jnp.all(jnp.isfinite(out)))

    # Pure-JAX reference with the same bf16 MXU-operand and bf16-output rounding.
    x_r_ref = x_img.reshape(B, -1).astype(jnp.bfloat16).astype(jnp.float32)
    w_r_ref = w_r.astype(jnp.bfloat16).astype(jnp.float32)
    r_ref = x_r_ref @ w_r_ref.T + b_r
    c_ref = x_lab @ (w_c * jnp.eye(N_OUT)).T + b_c
    rc_ref = jnp.clip(r_ref * c_ref, -80.0, 80.0)
    ref = jnp.tanh(0.5 * r_ref * (1.0 + jnp.exp(rc_ref)))
    ref = ref.astype(jnp.bfloat16).astype(jnp.float32)   # mimic bf16 output store
    assert bool(jnp.allclose(out, ref, atol=1e-2, rtol=1e-2))

    print("KERNEL_OK")
</pallas_src>

<mosaic_0001>
module attributes {stable_mosaic.version = 11 : i64} {
  func.func @_im_readout_kernel(%arg0: i32, %arg1: memref<8x64xf32, #tpu.memory_space<vmem>>, %arg2: memref<8x1xi32, #tpu.memory_space<vmem>>, %arg3: memref<128x64xbf16, #tpu.memory_space<vmem>>, %arg4: memref<1x128xf32, #tpu.memory_space<vmem>>, %arg5: memref<1x128xf32, #tpu.memory_space<vmem>>, %arg6: memref<1x128xf32, #tpu.memory_space<vmem>>, %arg7: memref<8x128xbf16, #tpu.memory_space<vmem>>) attributes {dimension_semantics = [#tpu.dimension_semantics<parallel>], iteration_bounds = array<i64: 2>, scalar_prefetch = 0 : i64, scratch_operands = 0 : i64, tpu.core_type = #tpu.core_type<tc>, window_params = [{transform_indices = @transform_0, window_bounds = array<i64: 8, 64>}, {transform_indices = @transform_1, window_bounds = array<i64: 8, 1>}, {pipeline_mode = #tpu.pipeline_mode<synchronous>, transform_indices = @transform_2, window_bounds = array<i64: 128, 64>}, {pipeline_mode = #tpu.pipeline_mode<synchronous>, transform_indices = @transform_3, window_bounds = array<i64: 1, 128>}, {pipeline_mode = #tpu.pipeline_mode<synchronous>, transform_indices = @transform_4, window_bounds = array<i64: 1, 128>}, {pipeline_mode = #tpu.pipeline_mode<synchronous>, transform_indices = @transform_5, window_bounds = array<i64: 1, 128>}, {transform_indices = @transform_6, window_bounds = array<i64: 8, 128>}]} {
    %c0 = arith.constant 0 : index
    %c0_0 = arith.constant 0 : index
    %0 = vector.load %arg1[%c0, %c0_0] : memref<8x64xf32, #tpu.memory_space<vmem>>, vector<8x64xf32>
    %1 = arith.truncf %0 : vector<8x64xf32> to vector<8x64xbf16>
    %c0_1 = arith.constant 0 : index
    %c0_2 = arith.constant 0 : index
    %2 = vector.load %arg3[%c0_1, %c0_2] : memref<128x64xbf16, #tpu.memory_space<vmem>>, vector<128x64xbf16>
    %cst = arith.constant dense<0.000000e+00> : vector<8x128xf32>
    %3 = tpu.matmul %1, %2, %cst {dimension_numbers = #tpu.dot_dimension_numbers<[1], [1], [0], [0], [0, 0, 1, 0], [], []>} : vector<8x64xbf16>, vector<128x64xbf16>, vector<8x128xf32> -> vector<8x128xf32>
    %c0_3 = arith.constant 0 : index
    %c0_4 = arith.constant 0 : index
    %4 = vector.load %arg4[%c0_3, %c0_4] : memref<1x128xf32, #tpu.memory_space<vmem>>, vector<1x128xf32>
    %5 = vector.broadcast %4 : vector<1x128xf32> to vector<8x128xf32>
    %6 = arith.addf %3, %5 : vector<8x128xf32>
    %7 = tpu.iota {dimensions = array<i32: 1>} : vector<8x128xi32>
    %c0_5 = arith.constant 0 : index
    %c0_6 = arith.constant 0 : index
    %8 = vector.load %arg5[%c0_5, %c0_6] : memref<1x128xf32, #tpu.memory_space<vmem>>, vector<1x128xf32>
    %c0_7 = arith.constant 0 : index
    %c0_8 = arith.constant 0 : index
    %9 = vector.load %arg6[%c0_7, %c0_8] : memref<1x128xf32, #tpu.memory_space<vmem>>, vector<1x128xf32>
    %10 = arith.addf %8, %9 : vector<1x128xf32>
    %c0_9 = arith.constant 0 : index
    %c0_10 = arith.constant 0 : index
    %11 = vector.load %arg2[%c0_9, %c0_10] : memref<8x1xi32, #tpu.memory_space<vmem>>, vector<8x1xi32>
    %12 = vector.broadcast %11 : vector<8x1xi32> to vector<8x128xi32>
    %13 = arith.cmpi eq, %7, %12 : vector<8x128xi32>
    %c0_11 = arith.constant 0 : index
    %c0_12 = arith.constant 0 : index
    %14 = vector.load %arg6[%c0_11, %c0_12] : memref<1x128xf32, #tpu.memory_space<vmem>>, vector<1x128xf32>
    %15 = vector.shape_cast %10 : vector<1x128xf32> to vector<1x128xf32>
    %16 = vector.broadcast %15 : vector<1x128xf32> to vector<8x128xf32>
    %17 = vector.shape_cast %14 : vector<1x128xf32> to vector<1x128xf32>
    %18 = vector.broadcast %17 : vector<1x128xf32> to vector<8x128xf32>
    %19 = arith.select %13, %16, %18 : vector<8x128xi1>, vector<8x128xf32>
    %20 = arith.mulf %6, %19 : vector<8x128xf32>
    %cst_13 = arith.constant -8.000000e+01 : f32
    %cst_14 = arith.constant 8.000000e+01 : f32
    %21 = vector.broadcast %cst_13 : f32 to vector<8x128xf32>
    %22 = arith.maximumf %21, %20 : vector<8x128xf32>
    %23 = vector.broadcast %cst_14 : f32 to vector<8x128xf32>
    %24 = arith.minimumf %23, %22 : vector<8x128xf32>
    %cst_15 = arith.constant 5.000000e-01 : f32
    %25 = vector.broadcast %cst_15 : f32 to vector<8x128xf32>
    %26 = arith.mulf %25, %6 : vector<8x128xf32>
    %27 = math.exp %24 : vector<8x128xf32>
    %cst_16 = arith.constant 1.000000e+00 : f32
    %28 = vector.broadcast %cst_16 : f32 to vector<8x128xf32>
    %29 = arith.addf %28, %27 : vector<8x128xf32>
    %30 = arith.mulf %26, %29 : vector<8x128xf32>
    %31 = math.tanh %30 : vector<8x128xf32>
    %32 = arith.truncf %31 : vector<8x128xf32> to vector<8x128xbf16>
    %c0_17 = arith.constant 0 : index
    %c0_18 = arith.constant 0 : index
    %33 = vector.load %arg7[%c0_17, %c0_18] : memref<8x128xbf16, #tpu.memory_space<vmem>>, vector<8x128xbf16>
    tpu.vector_store %arg7[%c0_17, %c0_18], %32 {strides = array<i32>} : memref<8x128xbf16, #tpu.memory_space<vmem>>, vector<8x128xbf16>,
    return
  }
  func.func @transform_0(%arg0: i32) -> (i32, i32) {
    %c0_i32 = arith.constant 0 : i32
    %c0_i32_0 = arith.constant 0 : i32
    return %arg0, %c0_i32 : i32, i32
  }
  func.func @transform_1(%arg0: i32) -> (i32, i32) {
    %c0_i32 = arith.constant 0 : i32
    %c0_i32_0 = arith.constant 0 : i32
    return %arg0, %c0_i32 : i32, i32
  }
  func.func @transform_2(%arg0: i32) -> (i32, i32) {
    %c0_i32 = arith.constant 0 : i32
    %c0_i32_0 = arith.constant 0 : i32
    %c0_i32_1 = arith.constant 0 : i32
    return %c0_i32, %c0_i32_0 : i32, i32
  }
  func.func @transform_3(%arg0: i32) -> (i32, i32) {
    %c0_i32 = arith.constant 0 : i32
    %c0_i32_0 = arith.constant 0 : i32
    %c0_i32_1 = arith.constant 0 : i32
    return %c0_i32, %c0_i32_0 : i32, i32
  }
  func.func @transform_4(%arg0: i32) -> (i32, i32) {
    %c0_i32 = arith.constant 0 : i32
    %c0_i32_0 = arith.constant 0 : i32
    %c0_i32_1 = arith.constant 0 : i32
    return %c0_i32, %c0_i32_0 : i32, i32
  }
  func.func @transform_5(%arg0: i32) -> (i32, i32) {
    %c0_i32 = arith.constant 0 : i32
    %c0_i32_0 = arith.constant 0 : i32
    %c0_i32_1 = arith.constant 0 : i32
    return %c0_i32, %c0_i32_0 : i32, i32
  }
  func.func @transform_6(%arg0: i32) -> (i32, i32) {
    %c0_i32 = arith.constant 0 : i32
    %c0_i32_0 = arith.constant 0 : i32
    return %arg0, %c0_i32 : i32, i32
  }
}

</mosaic_0001>

<bundles_post_ra>
// kernel: infomorphic_readout_forward.1
= control target key start
LH: loop header
LB: loop body
LE: loop exit
PB: predicated region body
PF: predicated region fallthrough
CT: control target
= control target key end

     0   :  { %s617_s21 = smov 0   ;;  %s683_s0 = inlined_call_operand.vmem [shape: f32[16,64], index: 0, kind: input, shape index: {}]   ;;  %s684_s1 = inlined_call_operand.vmem [shape: s32[16,1], index: 1, kind: input, shape index: {}]   ;;  %s685_s2 = inlined_call_operand.vmem [shape: bf16[128,64], index: 2, kind: input, shape index: {}]   ;;  %s686_s3 = inlined_call_operand.vmem [shape: f32[1,128], index: 3, kind: input, shape index: {}]   ;;  %s687_s4 = inlined_call_operand.vmem [shape: f32[1,128], index: 4, kind: input, shape index: {}]   ;;  %s688_s5 = inlined_call_operand.vmem [shape: f32[1,128], index: 5, kind: input, shape index: {}]   ;;  %s689_s6 = inlined_call_operand.vmem [shape: bf16[16,128], index: 6, kind: output, shape index: {}]  }
   0x1 LB: > { %s497_s22 = sadd.s32 4294967295, %s577_s21   ;;  %p501_p0 = scmp.ge.s32.totalorder %s577_s21, 1  ;;  %s577_s21 = sphi %s617_s21, %s16_s21  }
   0x2   : > { %p220_p1 = scmp.lt.s32.totalorder %s577_s21, 3 }
   0x4   : > { %p221_p2 = pnand %p501_p0, %p220_p1 }
   0x5   : > { %v559_v0 = vld [vmem:[%s685_s2] sm:$0xff] (!%p221_p2)   ;;  %v579_v1 = vmov (!%p221_p2), 0.0   ;;  %vm330_vm0 = vcmask (!%p221_p2), 523264   ;;  %v560_v3 = vld [vmem:[%s685_s2 + $0x8] sm:$0xff] (!%p221_p2)   ;;  %p252_p3 = scmp.lt.s32.totalorder (!%p221_p2), %s497_s22, 1  ;;  %vm580_vm1 = vmmov (!%p221_p2), 0   ;;  %v398_v21 = vlaneseq (!%p221_p2) }
   0x6   : > { %224 = sbr.rel (%p221_p2) target bundleno = 319 (0x13f), region = 44  ;;  %527 = vmatprep.subr.bf16.mxu0 (!%p221_p2), %v579_v1  ;;  %v335_v2 = vsel (!%p221_p2), %vm330_vm0, %v559_v0, 0  ;;  %v338_v4 = vsel (!%p221_p2), %vm330_vm0, %v560_v3, 0  ;;  %543 = vmatprep.mubr.msk.bf16.mxu0 (!%p221_p2), %vm580_vm1, %v579_v1  ;;  %v581_v5 = vmov (!%p221_p2), 0   ;;  %v561_v6 = vld [vmem:[%s685_s2 + $0x10] sm:$0xff] (!%p221_p2)   ;;  %v562_v9 = vld [vmem:[%s685_s2 + $0x18] sm:$0xff] (!%p221_p2)  }
   0x7   : > { %528 = vmatpush3.bf16.xpose.msra.mxu0 (!%p221_p2), %v335_v2  ;;  %558 = vset.pattern.permute.xlu0 (!%p221_p2), %v581_v5  ;;  %v341_v8 = vsel (!%p221_p2), %vm330_vm0, %v561_v6, 0  ;;  %v344_v10 = vsel (!%p221_p2), %vm330_vm0, %v562_v9, 0  ;;  %v563_v11 = vld [vmem:[%s685_s2 + $0x20] sm:$0xff] (!%p221_p2)   ;;  %v564_v13 = vld [vmem:[%s685_s2 + $0x28] sm:$0xff] (!%p221_p2)   ;;  %v565_v15 = vld [vmem:[%s685_s2 + $0x30] sm:$0xff] (!%p221_p2)   ;;  %v410_v22 = vshrl.u32 (!%p221_p2), %v398_v21, 7 }
   0x8   : > { %529 = vmatprep.subr.bf16.mxu0 (!%p221_p2), %v579_v1  ;;  %v347_v12 = vsel (!%p221_p2), %vm330_vm0, %v563_v11, 0  ;;  %v350_v14 = vsel (!%p221_p2), %vm330_vm0, %v564_v13, 0  ;;  %v353_v16 = vsel (!%p221_p2), %vm330_vm0, %v565_v15, 0  ;;  %v566_v17 = vld [vmem:[%s685_s2 + $0x38] sm:$0xff] (!%p221_p2)   ;;  %v400_v23 = vld [vmem:[%s687_s4] sm:$0x1] (!%p221_p2) }
   0x9   : > { %v356_v18 = vsel (!%p221_p2), %vm330_vm0, %v566_v17, 0  ;;  %v401_v24 = vld [vmem:[%s688_s5] sm:$0x1] (!%p221_p2)  ;;  %v411_v26 = vsub.s32 (!%p221_p2), 0, %v410_v22  ;;  %v399_v27 = vand.u32 (!%p221_p2), 127, %v398_v21 }
   0xa   : > { %v402_v25 = vadd.f32 (!%p221_p2), %v401_v24, %v400_v23  ;;  %v505_v31 = vld [vmem:[%s686_s3] ss:$0 sm:$0xff] (!%p221_p2) }
   0xb   : > { %v418_v30 = vrot.slane (!%p221_p2), %v401_v24, %v411_v26 }
   0xc   : > { %v412_v29 = vrot.slane (!%p221_p2), %v402_v25, %v411_v26 }
   0xd   : > { %s691_s22 = smov (!%p252_p3, %s497_s22), 1 }
   0xe   : > { %s502_s29 = sshll.u32 %s691_s22, 3  ;;  %s504_s30 = sshll.u32 %s691_s22, 2 }
   0xf   : > { %530 = vmatpush3.bf16.xpose.msra.mxu0 %v338_v4  ;;  %s259_s8 = scalar_lea.vmem %s684_s1, %s502_s29  ;;  %s255_s23 = scalar_lea.vmem %s683_s0, %s502_s29 }
  0x10   : > { %531 = vmatprep.subr.bf16.mxu0 %v579_v1  ;;  %v403_v7 = vld [vmem:[%s259_s8] sm:$0xff]  ;;  %s263_s9 = scalar_lea.vmem %s689_s6, %s504_s30 }
  0x11   : > { %405 = vperm.xlu0 %558, %v403_v7   ;;  %v265_v19 = vld [vmem:[%s255_s23] sm:$0xff] }
  0x12   : > { %v266_v20 = vpack.c.bf16 %v265_v19, %v265_v19 }
  0x17   : > { %532 = vmatpush3.bf16.xpose.msra.mxu0 %v341_v8 }
  0x18   : > { %533 = vmatprep.subr.bf16.mxu0 %v579_v1 }
  0x1f   : > { %534 = vmatpush3.bf16.xpose.msra.mxu0 %v344_v10 }
  0x20   : > { %535 = vmatprep.subr.bf16.mxu0 %v579_v1 }
  0x27   : > { %536 = vmatpush3.bf16.xpose.msra.mxu0 %v347_v12 }
  0x28   : > { %537 = vmatprep.subr.bf16.mxu0 %v579_v1 }
  0x2f   : > { %538 = vmatpush3.bf16.xpose.msra.mxu0 %v350_v14 }
  0x30   : > { %539 = vmatprep.subr.bf16.mxu0 %v579_v1 }
  0x37   : > { %540 = vmatpush3.bf16.xpose.msra.mxu0 %v353_v16 }
  0x38   : > { %541 = vmatprep.subr.bf16.mxu0 %v579_v1 }
  0x3f   : > { %542 = vmatpush3.bf16.xpose.msra.mxu0 %v356_v18 }
  0x46   : > { %544 = vmatmul.mubr.msk.bf16.vlgmr.msra.gmra.mrb[0].mxu0 %vm330_vm0, %v266_v20 }
  0x90   : > { %v406_v28 = vpop.permute.xlu0 %405 }
  0x91   : > { %vm407_vm2 = vcmp.eq.s32.totalorder %v399_v27, %v406_v28 }
  0x92   : > { %v420_v32 = vsel %vm407_vm2, %v412_v29, %v418_v30 }
 0x119   : > { %v392_v33 = vpop.f32.mrb[0].mxu0 }
 0x11a   : > { %v393_v34 = vadd.f32 %v505_v31, %v392_v33  ;;  %v545_v35 = vpop.f32.mrb[1].mxu0 }
 0x11b   : > { %v395_v36 = vpop.f32.mrb[2].mxu0 }
 0x11c   : > { %v421_v37 = vmul.f32 %v420_v32, %v393_v34  ;;  %v546_v38 = vpop.f32.mrb[3].mxu0  ;;  %v424_v42 = vmul.f32 0.5, %v393_v34 }
 0x11e   : > { %v515_v39 = vclamps-f32 %v421_v37, 80.0 }
 0x120   : > { %v425_v40 = vmul.f32 1.442695, %v515_v39 }
 0x122   : > { %567 = vpow2.f32 %v425_v40 }
 0x12c   : > { %v568_v41 = vpop.eup %567 }
 0x12d   : > { %v427_v43 = vadd.f32 1.0, %v568_v41 }
 0x12f   : > { %v428_v44 = vmul.f32 %v427_v43, %v424_v42 }
 0x131   : > { %569 = vtanh.f32 %v428_v44 }
 0x13b   : > { %v570_v45 = vpop.eup %569 }
 0x13c   : > { %v430_v46 = vpack.c.bf16 %v570_v45, %v570_v45 }
 0x13e   : > { %431 = vst [vmem:[%s263_s9] sm:$0xf] %v430_v46 }
 0x13f PF: > { %s16_s21 = sadd.s32 1, %s577_s21  }
 0x140   : > { %p13_p4 = scmp.ge.s32.totalorder %s16_s21, 4  }
 0x142   :  { %15 = sbr.rel (!%p13_p4) target bundleno = 1 (0x1), region = 77 }

</bundles_post_ra>
